<compile_context>
chip_gen: v5e
topology: v5e:2x2
jax: 0.10.0
libtpu: 0.0.40
codegen_flags: <defaults>
</compile_context>

<pallas_src>
import functools

import jax
import jax.numpy as jnp
from jax.experimental import pallas as pl
from jax.experimental.pallas import tpu as pltpu


# ---------------------------------------------------------------------------
# Pallas kernel: one (batch, T-tile) per grid step.
# ---------------------------------------------------------------------------
def _temporal_sep_kernel(x_ref, w_exp_ref, b_exp_ref, w_dep_ref, b_dep_ref,
                         w_pnt_ref, b_pnt_ref, o_ref, xh_ref, h_ref, *,
                         tws, pad, tile_t, T, n_tb):
    # x_ref:     (1, T, V*C)        bf16, full T resident per batch
    # w_exp_ref: (V*C, V*Ci)  bf16  block-diagonal      b_exp_ref: (1, V*Ci) f32
    # w_dep_ref: (tws, V*Ci)  f32   (tiled over V)      b_dep_ref: (1, V*Ci) f32
    # w_pnt_ref: (V*Ci, V*C)  bf16  block-diagonal      b_pnt_ref: (1, V*C)  f32
    # o_ref:     (1, tile_t, V*C)   f32
    # xh_ref:    (hs, V*C)    bf16  scratch: halo-extended x slab
    # h_ref:     (hs, V*Ci)   f32   scratch: expand-conv output (zero halo rows)
    hs = tile_t + 2 * pad
    VC = xh_ref.shape[1]
    VCi = h_ref.shape[1]
    j = pl.program_id(1)

    # ---- stage the halo-extended x slab into VMEM (no HBM pre-padding) ----------
    if n_tb == 1:
        # Whole T per step: fully static fill.
        xh_ref[pad:pad + T, :] = x_ref[0]
        if pad:
            zx = jnp.zeros((pad, VC), xh_ref.dtype)
            xh_ref[0:pad, :] = zx
            xh_ref[pad + T:hs, :] = zx
    else:
        @pl.when(jnp.logical_and(j > 0, j < n_tb - 1))
        def _interior():
            xh_ref[...] = x_ref[0, pl.ds(j * tile_t - pad, hs), :]

        @pl.when(j == 0)
        def _first():
            xh_ref[pad:hs, :] = x_ref[0, 0:tile_t + pad, :]
            if pad:
                xh_ref[0:pad, :] = jnp.zeros((pad, VC), xh_ref.dtype)

        @pl.when(j == n_tb - 1)
        def _last():
            xh_ref[0:hs - pad, :] = x_ref[0, T - (tile_t + pad):T, :]
            if pad:
                xh_ref[hs - pad:hs, :] = jnp.zeros((pad, VC), xh_ref.dtype)

    # ---- expand 1x1 conv (+ folded BN) + ReLU: block-diag bf16 MXU matmul -------
    h = jnp.dot(xh_ref[...], w_exp_ref[...], preferred_element_type=jnp.float32)
    h_ref[...] = jnp.maximum(h + b_exp_ref[...], 0.0)          # (hs, V*Ci) f32

    # The depthwise conv zero-pads h (not x): ReLU(b_exp) on a zero x row is NOT
    # zero, so zero the halo rows of h — only boundary tiles ever contain them.
    if pad:
        zh = jnp.zeros((pad, VCi), h_ref.dtype)
        if n_tb == 1:
            h_ref[0:pad, :] = zh
            h_ref[pad + T:hs, :] = zh
        else:
            @pl.when(j == 0)
            def _zero_top():
                h_ref[0:pad, :] = zh

            @pl.when(j == n_tb - 1)
            def _zero_bot():
                h_ref[hs - pad:hs, :] = zh

    # ---- depthwise temporal conv + bias + ReLU: shifted windows read from VMEM ---
    wd = w_dep_ref[...]                                         # (tws, V*Ci) f32
    acc = h_ref[0:tile_t, :] * wd[0:1, :] + b_dep_ref[...]
    for k in range(1, tws):                                     # static unrolled taps
        acc = acc + h_ref[k:k + tile_t, :] * wd[k:k + 1, :]
    acc = jnp.maximum(acc, 0.0)                                 # (tile_t, V*Ci) f32

    # ---- pointwise 1x1 conv (+ folded BN) + bias + residual, fused single store --
    y = jnp.dot(acc.astype(jnp.bfloat16), w_pnt_ref[...],
                preferred_element_type=jnp.float32) + b_pnt_ref[...]
    res = xh_ref[pad:pad + tile_t, :].astype(jnp.float32)       # stride==1 Identity
    # TODO(synk): stride>1 path (strided depthwise + Conv1x1+BN residual), the
    #             residual=False (Zero_Layer) and expand_ratio<=0 variants, and a
    #             (N, T*V, C) layout for large C (>=128) are not wired.
    o_ref[0] = (y + res).astype(o_ref.dtype)


# ---------------------------------------------------------------------------
# Wrapper: layout flattening, block-diagonal weight prep, pallas_call.
# ---------------------------------------------------------------------------
def temporal_sep_layer(x_ntvc, w_exp, b_exp, w_dep, b_dep, w_pnt, b_pnt, *,
                       tws, tile_t=None):
    """x_ntvc: (N, T, V, C) float32.  Weights already BN-folded (see make_params)."""
    N, T, V, C = x_ntvc.shape
    Ci = w_exp.shape[1]
    assert tws % 2 == 1, "temporal_window_size must be odd for 'same' output length"
    pad = (tws - 1) // 2
    VC, VCi = V * C, V * Ci

    # --- tile selection: prefer the whole T per step (no halo recompute) ---------
    if tile_t is None:
        if (T + 2 * pad) * VCi * 4 <= 4 * 1024 * 1024:   # f32 h slab fits easily
            tile_t = T
        else:
            tile_t = T
            for cand in (512, 256, 128, 64, 32, 16, 8):
                if cand < T and T % cand == 0:
                    tile_t = cand
                    break
    assert T % tile_t == 0, "tile_t must divide T"
    n_tb = T // tile_t
    if n_tb > 1:
        assert tile_t % 8 == 0 and tile_t >= pad and tile_t + pad <= T
    hs = tile_t + 2 * pad

    # --- bf16 lane-dense input, no HBM pre-padding --------------------------------
    x_flat = x_ntvc.reshape(N, T, VC).astype(jnp.bfloat16)

    # --- block-diagonal 1x1 conv weights: matmul directly on (rows, V*C) slabs ----
    eye_v = jnp.eye(V, dtype=w_exp.dtype)
    w_exp_bd = jnp.kron(eye_v, w_exp).astype(jnp.bfloat16)      # (V*C, V*Ci)
    w_pnt_bd = jnp.kron(eye_v, w_pnt).astype(jnp.bfloat16)      # (V*Ci, V*C)
    b_exp_t = jnp.tile(b_exp, (1, V))                           # (1, V*Ci)
    b_pnt_t = jnp.tile(b_pnt, (1, V))                           # (1, V*C)
    w_dep_t = jnp.tile(w_dep, (1, V))                           # (tws, V*Ci) f32
    b_dep_t = jnp.tile(b_dep, (1, V))                           # (1, V*Ci)   f32

    # --- VMEM budget (double buffers + scratch + intermediate headroom), capped ---
    vmem_bytes = (2 * T * VC * 2                 # resident x block, bf16
                  + 2 * tile_t * VC * 4          # output tile, f32
                  + 2 * (VC * VCi + VCi * VC) * 2  # block-diagonal weights, bf16
                  + 2 * ((tws + 2) * VCi + VC) * 4  # small bias / depthwise blocks
                  + hs * VC * 2 + hs * VCi * 4   # scratch slabs
                  + 4 * hs * VCi * 4)            # live f32 intermediates headroom
    vmem_limit = int(min(max(2 * vmem_bytes, 16 * 1024 * 1024), 48 * 1024 * 1024))

    kernel = functools.partial(_temporal_sep_kernel, tws=tws, pad=pad,
                               tile_t=tile_t, T=T, n_tb=n_tb)
    const = lambda shape: pl.BlockSpec(shape, lambda n, j: (0,) * len(shape))

    out_flat = pl.pallas_call(
        kernel,
        out_shape=jax.ShapeDtypeStruct((N, T, VC), x_ntvc.dtype),
        grid=(N, n_tb),
        in_specs=[
            pl.BlockSpec((1, T, VC), lambda n, j: (n, 0, 0)),    # x (resident per n)
            const((VC, VCi)),                                    # w_exp_bd (bf16)
            const((1, VCi)),                                     # b_exp (tiled)
            const((tws, VCi)),                                   # w_dep (tiled)
            const((1, VCi)),                                     # b_dep (tiled)
            const((VCi, VC)),                                    # w_pnt_bd (bf16)
            const((1, VC)),                                      # b_pnt (tiled)
        ],
        out_specs=pl.BlockSpec((1, tile_t, VC), lambda n, j: (n, j, 0)),
        scratch_shapes=[
            pltpu.VMEM((hs, VC), jnp.bfloat16),                  # xh halo slab
            pltpu.VMEM((hs, VCi), jnp.float32),                  # h (expand output)
        ],
        compiler_params=pltpu.CompilerParams(
            # T-tile axis kept "arbitrary": its x index_map ignores j, so megacore-
            # splitting it would duplicate the resident x DMA on v7x.
            dimension_semantics=("parallel", "arbitrary"),
            vmem_limit_bytes=vmem_limit),
    )(x_flat, w_exp_bd, b_exp_t, w_dep_t, b_dep_t, w_pnt_bd, b_pnt_t)

    return out_flat.reshape(N, T, V, C)


# ---------------------------------------------------------------------------
# Parameter setup + BN folding (plain JAX glue).
# ---------------------------------------------------------------------------
def _fold_bn(w, b, gamma, beta, mean, var, eps=1e-5):
    """Fold eval-mode BatchNorm into a conv. w has output-channel on axis -1."""
    scale = gamma / jnp.sqrt(var + eps)
    return w * scale, (b - mean) * scale + beta


def make_params(key, channel, expand_ratio, tws):
    Ci = channel * expand_ratio
    ks = jax.random.split(key, 18)
    u = lambda k, shape, s=0.2: jax.random.uniform(k, shape, jnp.float32, -s, s)

    def bn(k0, k1, k2, k3, n):
        gamma = 1.0 + u(k0, (n,))
        beta = u(k1, (n,))
        mean = u(k2, (n,))
        var = 1.0 + jnp.abs(u(k3, (n,)))
        return gamma, beta, mean, var

    # expand conv: PyTorch weight (Ci, C, 1, 1) -> matmul form (C, Ci)
    w_exp, b_exp = u(ks[0], (channel, Ci)), u(ks[1], (Ci,))
    w_exp, b_exp = _fold_bn(w_exp, b_exp, *bn(ks[2], ks[3], ks[4], ks[5], Ci))

    # depthwise conv: PyTorch weight (Ci, 1, K, 1) -> (K, Ci)
    w_dep, b_dep = u(ks[6], (tws, Ci)), u(ks[7], (Ci,))
    w_dep, b_dep = _fold_bn(w_dep, b_dep, *bn(ks[8], ks[9], ks[10], ks[11], Ci))

    # point conv: PyTorch weight (C, Ci, 1, 1) -> (Ci, C)
    w_pnt, b_pnt = u(ks[12], (Ci, channel)), u(ks[13], (channel,))
    w_pnt, b_pnt = _fold_bn(w_pnt, b_pnt, *bn(ks[14], ks[15], ks[16], ks[17], channel))

    return (w_exp, b_exp.reshape(1, Ci), w_dep, b_dep.reshape(1, Ci),
            w_pnt, b_pnt.reshape(1, channel))


# ---------------------------------------------------------------------------
# References (plain JAX).
# ---------------------------------------------------------------------------
def reference_f32(x, w_exp, b_exp, w_dep, b_dep, w_pnt, b_pnt, tws):
    pad = (tws - 1) // 2
    T = x.shape[1]
    h = jnp.maximum(jnp.einsum('ntvc,cd->ntvd', x, w_exp) + b_exp[0], 0.0)
    h_pad = jnp.pad(h, ((0, 0), (pad, pad), (0, 0), (0, 0)))
    acc = sum(h_pad[:, k:k + T] * w_dep[k] for k in range(tws)) + b_dep[0]
    acc = jnp.maximum(acc, 0.0)
    y = jnp.einsum('ntvd,dc->ntvc', acc, w_pnt) + b_pnt[0]
    return y + x


def reference_bf16(x, w_exp, b_exp, w_dep, b_dep, w_pnt, b_pnt, tws):
    """Same numerics as the kernel: bf16 input / bf16 matmul inputs, f32 accumulate."""
    pad = (tws - 1) // 2
    T = x.shape[1]
    xb = x.astype(jnp.bfloat16)
    h = jnp.einsum('ntvc,cd->ntvd', xb, w_exp.astype(jnp.bfloat16),
                   preferred_element_type=jnp.float32) + b_exp[0]
    h = jnp.maximum(h, 0.0)
    h_pad = jnp.pad(h, ((0, 0), (pad, pad), (0, 0), (0, 0)))
    acc = sum(h_pad[:, k:k + T] * w_dep[k] for k in range(tws)) + b_dep[0]
    acc = jnp.maximum(acc, 0.0)
    y = jnp.einsum('ntvd,dc->ntvc', acc.astype(jnp.bfloat16),
                   w_pnt.astype(jnp.bfloat16),
                   preferred_element_type=jnp.float32) + b_pnt[0]
    return y + xb.astype(jnp.float32)


if __name__ == "__main__":
    # Small shapes: batch=2, channel=4, T=16 frames, V=16 joints,
    # temporal_window_size=5, expand_ratio=2, stride=1, residual=True, act=ReLU.
    N, C, T, V = 2, 4, 16, 16
    TWS, EXPAND = 5, 2

    key = jax.random.PRNGKey(0)
    kx, kp = jax.random.split(key)
    x_nchw = jax.random.normal(kx, (N, C, T, V), jnp.float32)   # PyTorch NCHW = (N,C,T,V)
    params = make_params(kp, C, EXPAND, TWS)

    # NCHW (N,C,T,V) -> kernel layout (N,T,V,C)
    x_ntvc = jnp.transpose(x_nchw, (0, 2, 3, 1))

    # Default path: whole T per grid step (auto-selected at this size).
    out = temporal_sep_layer(x_ntvc, *params, tws=TWS)
    out = jax.block_until_ready(out)

    ref_match = reference_bf16(x_ntvc, *params, TWS)
    ref_full = reference_f32(x_ntvc, *params, TWS)
    err_m = float(jnp.max(jnp.abs(out - ref_match)))
    err_f = float(jnp.max(jnp.abs(out - ref_full)))
    assert err_m < 1e-3, f"mismatch vs bf16-matmul reference: {err_m}"
    assert err_f < 5e-2, f"mismatch vs f32 reference: {err_f}"

    # T-tiled path (in-kernel halo, pl.when boundary handling) must agree.
    out_tiled = temporal_sep_layer(x_ntvc, *params, tws=TWS, tile_t=8)
    out_tiled = jax.block_until_ready(out_tiled)
    err_t = float(jnp.max(jnp.abs(out_tiled - out)))
    assert err_t < 1e-5, f"tiled path mismatch vs whole-T path: {err_t}"

    # back to NCHW if a consumer needs PyTorch layout
    out_nchw = jnp.transpose(out, (0, 3, 1, 2))
    jax.block_until_ready(out_nchw)
    print("KERNEL_OK")
</pallas_src>

<mosaic_0001>
module attributes {stable_mosaic.version = 11 : i64} {
  func.func @_temporal_sep_kernel(%arg0: i32, %arg1: i32, %arg2: memref<1x16x64xbf16, #tpu.memory_space<vmem>>, %arg3: memref<64x128xbf16, #tpu.memory_space<vmem>>, %arg4: memref<1x128xf32, #tpu.memory_space<vmem>>, %arg5: memref<5x128xf32, #tpu.memory_space<vmem>>, %arg6: memref<1x128xf32, #tpu.memory_space<vmem>>, %arg7: memref<128x64xbf16, #tpu.memory_space<vmem>>, %arg8: memref<1x64xf32, #tpu.memory_space<vmem>>, %arg9: memref<1x16x64xf32, #tpu.memory_space<vmem>>, %arg10: memref<20x64xbf16, #tpu.memory_space<vmem>>, %arg11: memref<20x128xf32, #tpu.memory_space<vmem>>) attributes {dimension_semantics = [#tpu.dimension_semantics<parallel>, #tpu.dimension_semantics<arbitrary>], iteration_bounds = array<i64: 2, 1>, scalar_prefetch = 0 : i64, scratch_operands = 2 : i64, tpu.core_type = #tpu.core_type<tc>, window_params = [{transform_indices = @transform_0, window_bounds = array<i64: 1, 16, 64>}, {pipeline_mode = #tpu.pipeline_mode<synchronous>, transform_indices = @transform_1, window_bounds = array<i64: 64, 128>}, {pipeline_mode = #tpu.pipeline_mode<synchronous>, transform_indices = @transform_2, window_bounds = array<i64: 1, 128>}, {pipeline_mode = #tpu.pipeline_mode<synchronous>, transform_indices = @transform_3, window_bounds = array<i64: 5, 128>}, {pipeline_mode = #tpu.pipeline_mode<synchronous>, transform_indices = @transform_4, window_bounds = array<i64: 1, 128>}, {pipeline_mode = #tpu.pipeline_mode<synchronous>, transform_indices = @transform_5, window_bounds = array<i64: 128, 64>}, {pipeline_mode = #tpu.pipeline_mode<synchronous>, transform_indices = @transform_6, window_bounds = array<i64: 1, 64>}, {transform_indices = @transform_7, window_bounds = array<i64: 1, 16, 64>}]} {
    %c0 = arith.constant 0 : index
    %c0_0 = arith.constant 0 : index
    %c0_1 = arith.constant 0 : index
    %0 = vector.load %arg2[%c0, %c0_0, %c0_1] : memref<1x16x64xbf16, #tpu.memory_space<vmem>>, vector<1x16x64xbf16>
    %1 = vector.shape_cast %0 : vector<1x16x64xbf16> to vector<16x64xbf16>
    %c2 = arith.constant 2 : index
    %c0_2 = arith.constant 0 : index
    %2 = vector.load %arg10[%c2, %c0_2] : memref<20x64xbf16, #tpu.memory_space<vmem>>, vector<16x64xbf16>
    tpu.vector_store %arg10[%c2, %c0_2], %1 {strides = array<i32>} : memref<20x64xbf16, #tpu.memory_space<vmem>>, vector<16x64xbf16>,
    %cst = arith.constant 0.000000e+00 : bf16
    %3 = vector.broadcast %cst : bf16 to vector<2x64xbf16>
    %c0_3 = arith.constant 0 : index
    %c0_4 = arith.constant 0 : index
    %4 = vector.load %arg10[%c0_3, %c0_4] : memref<20x64xbf16, #tpu.memory_space<vmem>>, vector<2x64xbf16>
    tpu.vector_store %arg10[%c0_3, %c0_4], %3 {strides = array<i32>} : memref<20x64xbf16, #tpu.memory_space<vmem>>, vector<2x64xbf16>,
    %c18 = arith.constant 18 : index
    %c0_5 = arith.constant 0 : index
    %5 = vector.load %arg10[%c18, %c0_5] : memref<20x64xbf16, #tpu.memory_space<vmem>>, vector<2x64xbf16>
    tpu.vector_store %arg10[%c18, %c0_5], %3 {strides = array<i32>} : memref<20x64xbf16, #tpu.memory_space<vmem>>, vector<2x64xbf16>,
    %c0_6 = arith.constant 0 : index
    %c0_7 = arith.constant 0 : index
    %6 = vector.load %arg10[%c0_6, %c0_7] : memref<20x64xbf16, #tpu.memory_space<vmem>>, vector<20x64xbf16>
    %c0_8 = arith.constant 0 : index
    %c0_9 = arith.constant 0 : index
    %7 = vector.load %arg3[%c0_8, %c0_9] : memref<64x128xbf16, #tpu.memory_space<vmem>>, vector<64x128xbf16>
    %cst_10 = arith.constant dense<0.000000e+00> : vector<20x128xf32>
    %8 = tpu.matmul %6, %7, %cst_10 {dimension_numbers = #tpu.dot_dimension_numbers<[1], [0], [0], [1], [0, 0, 1, 1], [], []>} : vector<20x64xbf16>, vector<64x128xbf16>, vector<20x128xf32> -> vector<20x128xf32>
    %c0_11 = arith.constant 0 : index
    %c0_12 = arith.constant 0 : index
    %9 = vector.load %arg4[%c0_11, %c0_12] : memref<1x128xf32, #tpu.memory_space<vmem>>, vector<1x128xf32>
    %10 = vector.broadcast %9 : vector<1x128xf32> to vector<20x128xf32>
    %11 = arith.addf %8, %10 : vector<20x128xf32>
    %cst_13 = arith.constant 0.000000e+00 : f32
    %12 = vector.broadcast %cst_13 : f32 to vector<20x128xf32>
    %13 = arith.maximumf %11, %12 : vector<20x128xf32>
    %c0_14 = arith.constant 0 : index
    %c0_15 = arith.constant 0 : index
    %14 = vector.load %arg11[%c0_14, %c0_15] : memref<20x128xf32, #tpu.memory_space<vmem>>, vector<20x128xf32>
    tpu.vector_store %arg11[%c0_14, %c0_15], %13 {strides = array<i32>} : memref<20x128xf32, #tpu.memory_space<vmem>>, vector<20x128xf32>,
    %cst_16 = arith.constant 0.000000e+00 : f32
    %15 = vector.broadcast %cst_16 : f32 to vector<2x128xf32>
    %c0_17 = arith.constant 0 : index
    %c0_18 = arith.constant 0 : index
    %16 = vector.load %arg11[%c0_17, %c0_18] : memref<20x128xf32, #tpu.memory_space<vmem>>, vector<2x128xf32>
    tpu.vector_store %arg11[%c0_17, %c0_18], %15 {strides = array<i32>} : memref<20x128xf32, #tpu.memory_space<vmem>>, vector<2x128xf32>,
    %c18_19 = arith.constant 18 : index
    %c0_20 = arith.constant 0 : index
    %17 = vector.load %arg11[%c18_19, %c0_20] : memref<20x128xf32, #tpu.memory_space<vmem>>, vector<2x128xf32>
    tpu.vector_store %arg11[%c18_19, %c0_20], %15 {strides = array<i32>} : memref<20x128xf32, #tpu.memory_space<vmem>>, vector<2x128xf32>,
    %c0_21 = arith.constant 0 : index
    %c0_22 = arith.constant 0 : index
    %18 = vector.load %arg5[%c0_21, %c0_22] : memref<5x128xf32, #tpu.memory_space<vmem>>, vector<5x128xf32>
    %c0_23 = arith.constant 0 : index
    %c0_24 = arith.constant 0 : index
    %19 = vector.load %arg11[%c0_23, %c0_24] : memref<20x128xf32, #tpu.memory_space<vmem>>, vector<16x128xf32>
    %20 = vector.extract_strided_slice %18 {offsets = [0, 0], sizes = [1, 128], strides = [1, 1]} : vector<5x128xf32> to vector<1x128xf32>
    %21 = vector.broadcast %20 : vector<1x128xf32> to vector<16x128xf32>
    %22 = arith.mulf %19, %21 : vector<16x128xf32>
    %c0_25 = arith.constant 0 : index
    %c0_26 = arith.constant 0 : index
    %23 = vector.load %arg6[%c0_25, %c0_26] : memref<1x128xf32, #tpu.memory_space<vmem>>, vector<1x128xf32>
    %24 = vector.broadcast %23 : vector<1x128xf32> to vector<16x128xf32>
    %25 = arith.addf %22, %24 : vector<16x128xf32>
    %c1 = arith.constant 1 : index
    %c0_27 = arith.constant 0 : index
    %26 = vector.load %arg11[%c1, %c0_27] : memref<20x128xf32, #tpu.memory_space<vmem>>, vector<16x128xf32>
    %27 = vector.extract_strided_slice %18 {offsets = [1, 0], sizes = [1, 128], strides = [1, 1]} : vector<5x128xf32> to vector<1x128xf32>
    %28 = vector.broadcast %27 : vector<1x128xf32> to vector<16x128xf32>
    %29 = arith.mulf %26, %28 : vector<16x128xf32>
    %30 = arith.addf %25, %29 : vector<16x128xf32>
    %c2_28 = arith.constant 2 : index
    %c0_29 = arith.constant 0 : index
    %31 = vector.load %arg11[%c2_28, %c0_29] : memref<20x128xf32, #tpu.memory_space<vmem>>, vector<16x128xf32>
    %32 = vector.extract_strided_slice %18 {offsets = [2, 0], sizes = [1, 128], strides = [1, 1]} : vector<5x128xf32> to vector<1x128xf32>
    %33 = vector.broadcast %32 : vector<1x128xf32> to vector<16x128xf32>
    %34 = arith.mulf %31, %33 : vector<16x128xf32>
    %35 = arith.addf %30, %34 : vector<16x128xf32>
    %c3 = arith.constant 3 : index
    %c0_30 = arith.constant 0 : index
    %36 = vector.load %arg11[%c3, %c0_30] : memref<20x128xf32, #tpu.memory_space<vmem>>, vector<16x128xf32>
    %37 = vector.extract_strided_slice %18 {offsets = [3, 0], sizes = [1, 128], strides = [1, 1]} : vector<5x128xf32> to vector<1x128xf32>
    %38 = vector.broadcast %37 : vector<1x128xf32> to vector<16x128xf32>
    %39 = arith.mulf %36, %38 : vector<16x128xf32>
    %40 = arith.addf %35, %39 : vector<16x128xf32>
    %c4 = arith.constant 4 : index
    %c0_31 = arith.constant 0 : index
    %41 = vector.load %arg11[%c4, %c0_31] : memref<20x128xf32, #tpu.memory_space<vmem>>, vector<16x128xf32>
    %42 = vector.extract_strided_slice %18 {offsets = [4, 0], sizes = [1, 128], strides = [1, 1]} : vector<5x128xf32> to vector<1x128xf32>
    %43 = vector.broadcast %42 : vector<1x128xf32> to vector<16x128xf32>
    %44 = arith.mulf %41, %43 : vector<16x128xf32>
    %45 = arith.addf %40, %44 : vector<16x128xf32>
    %cst_32 = arith.constant 0.000000e+00 : f32
    %46 = vector.broadcast %cst_32 : f32 to vector<16x128xf32>
    %47 = arith.maximumf %45, %46 : vector<16x128xf32>
    %48 = arith.truncf %47 : vector<16x128xf32> to vector<16x128xbf16>
    %c0_33 = arith.constant 0 : index
    %c0_34 = arith.constant 0 : index
    %49 = vector.load %arg7[%c0_33, %c0_34] : memref<128x64xbf16, #tpu.memory_space<vmem>>, vector<128x64xbf16>
    %cst_35 = arith.constant dense<0.000000e+00> : vector<16x64xf32>
    %50 = tpu.matmul %48, %49, %cst_35 {dimension_numbers = #tpu.dot_dimension_numbers<[1], [0], [0], [1], [0, 0, 1, 1], [], []>} : vector<16x128xbf16>, vector<128x64xbf16>, vector<16x64xf32> -> vector<16x64xf32>
    %c0_36 = arith.constant 0 : index
    %c0_37 = arith.constant 0 : index
    %51 = vector.load %arg8[%c0_36, %c0_37] : memref<1x64xf32, #tpu.memory_space<vmem>>, vector<1x64xf32>
    %52 = vector.broadcast %51 : vector<1x64xf32> to vector<16x64xf32>
    %53 = arith.addf %50, %52 : vector<16x64xf32>
    %c2_38 = arith.constant 2 : index
    %c0_39 = arith.constant 0 : index
    %54 = vector.load %arg10[%c2_38, %c0_39] : memref<20x64xbf16, #tpu.memory_space<vmem>>, vector<16x64xbf16>
    %55 = arith.extf %54 : vector<16x64xbf16> to vector<16x64xf32>
    %56 = arith.addf %53, %55 : vector<16x64xf32>
    %c0_40 = arith.constant 0 : index
    %c0_41 = arith.constant 0 : index
    %c0_42 = arith.constant 0 : index
    %57 = vector.load %arg9[%c0_40, %c0_41, %c0_42] : memref<1x16x64xf32, #tpu.memory_space<vmem>>, vector<1x16x64xf32>
    %58 = vector.shape_cast %57 : vector<1x16x64xf32> to vector<16x64xf32>
    %59 = vector.shape_cast %56 : vector<16x64xf32> to vector<1x16x64xf32>
    tpu.vector_store %arg9[%c0_40, %c0_41, %c0_42], %59 {strides = array<i32>} : memref<1x16x64xf32, #tpu.memory_space<vmem>>, vector<1x16x64xf32>,
    return
  }
  func.func @transform_0(%arg0: i32, %arg1: i32) -> (i32, i32, i32) {
    %c0_i32 = arith.constant 0 : i32
    %c0_i32_0 = arith.constant 0 : i32
    %c0_i32_1 = arith.constant 0 : i32
    return %arg0, %c0_i32, %c0_i32_0 : i32, i32, i32
  }
  func.func @transform_1(%arg0: i32, %arg1: i32) -> (i32, i32) {
    %c0_i32 = arith.constant 0 : i32
    %c0_i32_0 = arith.constant 0 : i32
    %c0_i32_1 = arith.constant 0 : i32
    return %c0_i32, %c0_i32_0 : i32, i32
  }
  func.func @transform_2(%arg0: i32, %arg1: i32) -> (i32, i32) {
    %c0_i32 = arith.constant 0 : i32
    %c0_i32_0 = arith.constant 0 : i32
    %c0_i32_1 = arith.constant 0 : i32
    return %c0_i32, %c0_i32_0 : i32, i32
  }
  func.func @transform_3(%arg0: i32, %arg1: i32) -> (i32, i32) {
    %c0_i32 = arith.constant 0 : i32
    %c0_i32_0 = arith.constant 0 : i32
    %c0_i32_1 = arith.constant 0 : i32
    return %c0_i32, %c0_i32_0 : i32, i32
  }
  func.func @transform_4(%arg0: i32, %arg1: i32) -> (i32, i32) {
    %c0_i32 = arith.constant 0 : i32
    %c0_i32_0 = arith.constant 0 : i32
    %c0_i32_1 = arith.constant 0 : i32
    return %c0_i32, %c0_i32_0 : i32, i32
  }
  func.func @transform_5(%arg0: i32, %arg1: i32) -> (i32, i32) {
    %c0_i32 = arith.constant 0 : i32
    %c0_i32_0 = arith.constant 0 : i32
    %c0_i32_1 = arith.constant 0 : i32
    return %c0_i32, %c0_i32_0 : i32, i32
  }
  func.func @transform_6(%arg0: i32, %arg1: i32) -> (i32, i32) {
    %c0_i32 = arith.constant 0 : i32
    %c0_i32_0 = arith.constant 0 : i32
    %c0_i32_1 = arith.constant 0 : i32
    return %c0_i32, %c0_i32_0 : i32, i32
  }
  func.func @transform_7(%arg0: i32, %arg1: i32) -> (i32, i32, i32) {
    %c0_i32 = arith.constant 0 : i32
    %c0_i32_0 = arith.constant 0 : i32
    return %arg0, %arg1, %c0_i32 : i32, i32, i32
  }
}

</mosaic_0001>

<bundles_post_ra>
// kernel: tpu_custom_call.1
= control target key start
LH: loop header
LB: loop body
LE: loop exit
PB: predicated region body
PF: predicated region fallthrough
CT: control target
= control target key end

     0   :  { %12 = vsyncpa [#allocation5], 0  ;;  %s1057_s0 = inlined_call_operand.vmem [shape: bf16[2,16,64], index: 0, kind: input, shape index: {}]   ;;  %s1058_s1 = inlined_call_operand.vmem [shape: bf16[64,128], index: 1, kind: input, shape index: {}]   ;;  %s1059_s2 = inlined_call_operand.vmem [shape: f32[1,128], index: 2, kind: input, shape index: {}]   ;;  %s1060_s3 = inlined_call_operand.vmem [shape: f32[5,128], index: 3, kind: input, shape index: {}]   ;;  %s1061_s4 = inlined_call_operand.vmem [shape: f32[1,128], index: 4, kind: input, shape index: {}]   ;;  %s1062_s5 = inlined_call_operand.vmem [shape: bf16[128,64], index: 5, kind: input, shape index: {}]   ;;  %s1063_s6 = inlined_call_operand.vmem [shape: f32[1,64], index: 6, kind: input, shape index: {}]   ;;  %s1064_s7 = inlined_call_operand.hbm [shape: f32[2,16,64], index: 7, kind: output, shape index: {}]  }
   0x1   :  { %14 = vsyncpa [#allocation5 + $0x1], 0  ;;  %s906_s24 = smov 0   ;;  %s908_s25 = smov 0  }
   0x2   :  { %s910_s26 = smov 0   ;;  %s912_s27 = smov 0  }
   0x3   :  { %s914_s28 = smov 0   ;;  %s916_s29 = smov 0  }
   0x4 LB: > { %s634_s30 = sadd.s32 4294967295, %s860_s29   ;;  %s635_s8 = sadd.s32 4294967294, %s860_s29   ;;  %s860_s29 = sphi %s916_s29, %s20_s29   ;;  %s856_s28 = sphi %s914_s28, %s1071_s28   ;;  %s852_s27 = sphi %s912_s27, %s1070_s27   ;;  %s848_s26 = sphi %s910_s26, %s1069_s26   ;;  %s844_s25 = sphi %s908_s25, %s1068_s25   ;;  %s840_s24 = sphi %s906_s24, %s1067_s24  }
   0x5   : > { %s32_s9 = sadd.s32 1, %s856_s28  ;;  %s193_s10 = sadd.s32 1, %s848_s26 }
   0x6   : > { %p34_p0 = scmp.ge.s32.totalorder %s32_s9, 2  ;;  %p203_p1 = scmp.ne.s32.totalorder %s848_s26, %s844_s25 }
   0x7   : > { %p204_p2 = scmp.eq.s32.totalorder %s634_s30, 1  ;;  %p209_p3 = scmp.ne.s32.totalorder %s844_s25, %s840_s24 }
   0x8   : > { %s1073_s9 = smov (%p34_p0, %s32_s9), 0  ;;  %p210_p5 = scmp.eq.s32.totalorder %s635_s8, 1 }
   0x9   : > { %p946_p4 = por %p204_p2, %p203_p1  ;;  %s188_s12 = ssub.s32 %s856_s28, %s1073_s9 }
   0xa   : > { %p638_p6 = scmp.ge.s32.totalorder %s860_s29, 1  ;;  %p191_p7 = scmp.eq.s32.totalorder %s188_s12, 0 }
   0xb   : > { %p953_p8 = por %p210_p5, %p209_p3  ;;  %p254_p9 = scmp.lt.s32.totalorder %s860_s29, 3 }
   0xc   : > { %s959_s14 = scalar_select %p191_p7, %s848_s26, %s193_s10  }
   0xd   : > { %p255_p10 = pnand %p638_p6, %p254_p9 }
   0xe   : > { %p286_p11 = scmp.lt.s32.totalorder (!%p255_p10), %s852_s27, 1  ;;  %s283_s30 = sand.u32 (!%p255_p10), 1, %s844_s25  }
   0xf   : > { %258 = sbr.rel (%p255_p10) target bundleno = 341 (0x155), region = 48  ;;  %s639_s12 = sshll.u32 (!%p255_p10), %s283_s30, 4 }
  0x10   : > { %s715_s15 = sshll.u32 (!%p255_p10), %s852_s27, 4  ;;  %s285_s16 = scalar_lea.vmem (!%p255_p10), [#allocation4], %s639_s12 }
  0x11   : > { %s802_s12 = scalar_lea.hbm (!%p255_p10), %s1064_s7, 32 }
  0x14   : > { %v706_v0 = vld [vmem:[%s1058_s1 + $0x18] sm:$0xff]  ;;  %vm312_vm0 = vcmask 516096   ;;  %v705_v1 = vld [vmem:[%s1058_s1 + $0x10] sm:$0xff]  ;;  %s287_s19 = scalar_select %p286_p11, %s852_s27, 1  ;;  %v862_v2 = vmov 0   ;;  %vm315_vm1 = vcmask 517121  }
  0x15   : > { %375 = vmatpush.bf16.msra.mxu0 %v706_v0  ;;  %716 = vmatpush.bf16.msra.mxu2 %v706_v0  ;;  %314 = vst.msk [vmem:[#allocation2] sm:$0x1] %vm312_vm0, %v862_v2  ;;  %vm297_vm2 = vcmask 1040384   ;;  %vm298_vm3 = vcmask 1044484   ;;  %v704_v3 = vld [vmem:[%s1058_s1 + $0x8] sm:$0xff]  ;;  %vm308_vm4 = vcmask 519169  }
  0x16   : > { %316 = vst.msk [vmem:[#allocation2 + $0x8] sm:$0x2] %vm315_vm1, %v862_v2  ;;  %s701_s20 = sshll.u32 %s287_s19, 3  ;;  %vm299_vm5 = vmor %vm297_vm2, %vm298_vm3  ;;  %vm310_vm6 = vcmask 519168   ;;  %v703_v10 = vld [vmem:[%s1058_s1] sm:$0xff]  ;;  %vm364_vm7 = vcmask 523264   ;;  %s557_s19 = scalar_lea.hbm %s1064_s7, %s715_s15 }
  0x17   : > { %s290_s23 = scalar_lea.vmem %s1057_s0, %s701_s20  ;;  %v714_v16 = vld [vmem:[%s1062_s5 + $0x38] sm:$0xff]  ;;  %v713_v17 = vld [vmem:[%s1062_s5 + $0x30] sm:$0xff]  ;;  %v712_v18 = vld [vmem:[%s1062_s5 + $0x28] sm:$0xff]  ;;  %v863_v28 = vmov 0.0   ;;  %vm531_vm8 = vcmask 1045504   ;;  %s558_s20 = sshll.u32 %s285_s16, 4  ;;  %s559_s20 = int_to_ptr.vmem [resolvable:$true] %s558_s20 }
  0x18   : > { %v293_v4 = vld [vmem:[%s290_s23] sm:$0xf]  ;;  %v294_v5 = vld [vmem:[%s290_s23 + $0x4] sm:$0xf]  ;;  %508 = vmatpush.bf16.msra.mxu1 %v714_v16  ;;  %v710_v20 = vld [vmem:[%s1062_s5 + $0x18] sm:$0xff]  ;;  %s560_s21 = sshll.u32 %s557_s19, 4  ;;  %s561_s21 = int_to_ptr.hbm [resolvable:$true] %s560_s21 }
  0x19   : > { %376 = vmatpush.bf16.msra.mxu0 %v705_v1  ;;  %717 = vmatpush.bf16.msra.mxu2 %v705_v1  ;;  %v300_v6 = vrot.slane %v293_v4, 7  ;;  %v302_v7 = vrot.slane %v294_v5, 7  ;;  %v711_v19 = vld [vmem:[%s1062_s5 + $0x20] sm:$0xff]  ;;  %v709_v21 = vld [vmem:[%s1062_s5 + $0x10] sm:$0xff]  ;;  %v708_v22 = vld [vmem:[%s1062_s5 + $0x8] sm:$0xff]  ;;  %s544_s27 = scalar_lea.sflag [#allocation5], %s283_s30 }
  0x1a   : > { %v779_v23 = vld [vmem:[%s1059_s2] ss:$0 sm:$0xff]  ;;  %s796_s22 = sshra.s32 %s561_s21, 4  ;;  %s797_s22 = int_to_ptr.hbm [resolvable:$true] %s796_s22 }
  0x1b   : > { %v301_v8 = vrot.slane %v300_v6, 4  ;;  %309 = vst.msk [vmem:[#allocation2] sm:$0xe] %vm308_vm4, %v300_v6  ;;  %v304_v9 = vrot.slane %v302_v7, 4  ;;  %v707_v24 = vld [vmem:[%s1062_s5] sm:$0xff]  ;;  %s798_s23 = scalar_lea.hbm %s797_s22, 16  ;;  %p803_p1 = scmp.lt.s32.totalorder %s797_s22, %s1064_s7 }
  0x1c   : > { %509 = vmatpush.bf16.msra.mxu1 %v713_v17  ;;  %v397_v35 = vld [vmem:[%s1060_s3] sm:$0x1f]  ;;  %p799_p12 = scmp.ne.s32.totalorder %s797_s22, %s798_s23  ;;  %p804_p2 = scmp.lt.s32.totalorder %s802_s12, %s798_s23 }
  0x1d   : > { %377 = vmatpush.bf16.msra.mxu0 %v704_v3  ;;  %718 = vmatpush.bf16.msra.mxu2 %v704_v3  ;;  %v303_v11 = vsel %vm299_vm5, %v301_v8, %v302_v7  ;;  %313 = vst.msk [vmem:[#allocation2 + $0x8] sm:$0x1] %vm312_vm0, %v304_v9  ;;  %v400_v36 = vperm.slane %v397_v35, 0  ;;  %v780_v41 = vld [vmem:[%s1061_s4] ss:$0 sm:$0xff]  ;;  %v411_v42 = vperm.slane %v397_v35, 1 }
  0x1e   : > { %311 = vst.msk [vmem:[#allocation2 + $0x4] sm:$0xf] %vm310_vm6, %v303_v11  ;;  %v418_v43 = vperm.slane %v397_v35, 2  ;;  %v425_v47 = vperm.slane %v397_v35, 3  ;;  %v432_v55 = vperm.slane %v397_v35, 4  ;;  %p800_p13 = pnand %p799_p12, %p946_p4  ;;  %p805_p3 = por %p804_p2, %p803_p1 }
  0x1f   : > { %v781_v17 = vld [vmem:[%s1063_s6] ss:$0 sm:$0xff] }
  0x20   : > { %510 = vmatpush.bf16.msra.mxu1 %v712_v18  ;;  %p801_p0 = pneg %p800_p13 }
  0x21   : > { %378 = vmatpush.bf16.msra.mxu0 %v703_v10  ;;  %719 = vmatpush.bf16.msra.mxu2 %v703_v10 }
  0x22   : > { %v522_v11 = vld [vmem:[#allocation2] sm:$0xe]  ;;  %p806_p5 = pnand %p805_p3, %p801_p0 }
  0x24   : > { %v319_v12 = vld [vmem:[#allocation2 + $0x8] sm:$0x3]  ;;  %511 = vmatpush.bf16.msra.mxu1 %v711_v19 }
  0x25   : > { %v702_v13 = vld [vmem:[#allocation2] sm:$0xff]  ;;  %v337_v14 = vunpack.c.l.b16 %v319_v12  ;;  %v524_v18 = vld [vmem:[#allocation2 + $0x8] sm:$0x1] }
  0x26   : > { %662 = vmatmul.msk.bf16.vlgmr.msra.gmra.mxu0 %vm364_vm7, %v702_v13  ;;  %v523_v12 = vld [vmem:[#allocation2 + $0x4] sm:$0xf]  ;;  %v525_v13 = vunpack.c.l.bf16 %v522_v11 }
  0x27   : > { %v339_v15 = vpack.c.b16 %v337_v14, %v337_v14  ;;  %v526_v14 = vunpack.c.l.bf16 %v523_v12 }
  0x28   : > { %512 = vmatpush.bf16.msra.mxu1 %v710_v20 }
  0x29   : > { %663 = vmatmul.msk.bf16.vlgmr.msra.gmra.mxu2 %vm364_vm7, %v339_v15  ;;  %v532_v15 = vrot.slane %v525_v13, 2  ;;  %v533_v16 = vrot.slane %v526_v14, 2 }
  0x2b   : > { %v534_v20 = vsel %vm531_vm8, %v532_v15, %v533_v16 }
  0x2c   : > { %513 = vmatpush.bf16.msra.mxu1 %v709_v21  ;;  %v527_v21 = vunpack.c.l.bf16 %v524_v18 }
  0x30   : > { %514 = vmatpush.bf16.msra.mxu1 %v708_v22 }
  0x34   : > { %515 = vmatpush.bf16.msra.mxu1 %v707_v24  ;;  %v535_v24 = vrot.slane %v527_v21, 2 }
  0xa3   : > { %v380_v25 = vpop.f32.mrf.mxu0 }
  0xa4   : > { %v381_v26 = vadd.f32 %v779_v23, %v380_v25 }
  0xa6   : > { %v389_v27 = vmax.f32 %v381_v26, 0.0  ;;  %v536_v26 = vsel %vm531_vm8, %v533_v16, %v535_v24 }
  0xa8   : > { %392 = vst [vmem:[#allocation3] sm:$0xff] %v389_v27 }
  0xa9   : > { %395 = vst [vmem:[#allocation3] sm:$0x3] %v863_v28 }
  0xab   : > { %v382_v30 = vpop.f32.mrf.mxu0 }
  0xac   : > { %v385_v29 = vpop.f32.mrf.mxu2  ;;  %v383_v32 = vadd.f32 %v779_v23, %v382_v30 }
  0xad   : > { %v386_v31 = vadd.f32 %v779_v23, %v385_v29 }
  0xae   : > { %v390_v34 = vmax.f32 %v383_v32, 0.0 }
  0xaf   : > { %v391_v33 = vmax.f32 %v386_v31, 0.0 }
  0xb0   : > { %393 = vst [vmem:[#allocation3 + $0x8] sm:$0xff] %v390_v34  ;;  %v398_v38 = vld [vmem:[#allocation3] sm:$0xff]  ;;  %v402_v40 = vmul.f32 %v400_v36, %v390_v34 }
  0xb1   : > { %394 = vst [vmem:[#allocation3 + $0x10] sm:$0xf] %v391_v33  ;;  %v401_v39 = vmul.f32 %v400_v36, %v398_v38 }
  0xb2   : > { %396 = vst [vmem:[#allocation3 + $0x12] sm:$0x3] %v863_v28  ;;  %v408_v49 = vadd.f32 %v780_v41, %v402_v40 }
  0xb3   : > { %v407_v48 = vadd.f32 %v780_v41, %v401_v39 }
  0xb4   : > { %v387_v37 = vpop.f32.mrf.mxu2 }
  0xb7   : > { %v409_v44 = vld [vmem:[#allocation3 + $0x1] sm:$0xff] }
  0xb8   : > { %v410_v45 = vld [vmem:[#allocation3 + $0x9] sm:$0xff]  ;;  %v412_v50 = vmul.f32 %v411_v42, %v409_v44 }
  0xb9   : > { %v416_v46 = vld [vmem:[#allocation3 + $0x2] sm:$0xff]  ;;  %v413_v51 = vmul.f32 %v411_v42, %v410_v45  ;;  %v417_v52 = vld [vmem:[#allocation3 + $0xa] sm:$0xff] }
  0xba   : > { %v423_v53 = vld [vmem:[#allocation3 + $0x3] sm:$0xff]  ;;  %v424_v54 = vld [vmem:[#allocation3 + $0xb] sm:$0xff]  ;;  %v414_v56 = vadd.f32 %v412_v50, %v407_v48  ;;  %v419_v58 = vmul.f32 %v418_v43, %v416_v46  ;;  %v420_v59 = vmul.f32 %v418_v43, %v417_v52 }
  0xbb   : > { %v415_v57 = vadd.f32 %v413_v51, %v408_v49  ;;  %v430_v60 = vld [vmem:[#allocation3 + $0x4] sm:$0xff]  ;;  %v431_v61 = vld [vmem:[#allocation3 + $0xc] sm:$0xff]  ;;  %v426_v0 = vmul.f32 %v425_v47, %v423_v53  ;;  %v427_v1 = vmul.f32 %v425_v47, %v424_v54 }
  0xbc   : > { %v421_v62 = vadd.f32 %v419_v58, %v414_v56  ;;  %v433_v4 = vmul.f32 %v432_v55, %v430_v60  ;;  %v434_v5 = vmul.f32 %v432_v55, %v431_v61 }
  0xbd   : > { %v422_v63 = vadd.f32 %v420_v59, %v415_v57 }
  0xbe   : > { %v428_v2 = vadd.f32 %v426_v0, %v421_v62 }
  0xbf   : > { %v429_v3 = vadd.f32 %v427_v1, %v422_v63 }
  0xc0   : > { %v435_v6 = vadd.f32 %v433_v4, %v428_v2 }
  0xc1   : > { %v436_v7 = vadd.f32 %v434_v5, %v429_v3 }
  0xc2   : > { %v437_v8 = vmax.f32 %v435_v6, 0.0 }
  0xc3   : > { %v438_v9 = vmax.f32 %v436_v7, 0.0 }
  0xc5   : > { %v439_v10 = vpack.c.bf16 %v438_v9, %v437_v8 }
  0xc7   : > { %516 = vmatmul.bf16.vlgmr.msra.gmra.mxu1 %v439_v10 }
 0x144   : > { %v517_v19 = vpop.f32.mrf.mxu1 }
 0x145   : > { %v518_v22 = vadd.f32 %v781_v17, %v517_v19 }
 0x147   : > { %v539_v23 = vadd.f32 %v534_v20, %v518_v22 }
 0x149   : > { %541 = vst.msk [vmem:[%s285_s16] sm:$0xff] %vm364_vm7, %v539_v23 }
 0x14c   : > { %v519_v25 = vpop.f32.mrf.mxu1 }
 0x14d   : > { %v520_v27 = vadd.f32 %v781_v17, %v519_v25 }
 0x14f   : > { %v540_v28 = vadd.f32 %v536_v26, %v520_v27 }
 0x151   : > { %542 = vst.msk [vmem:[%s285_s16 + $0x8] sm:$0xff] %vm364_vm7, %v540_v28 }
 0x152   : > { %809 = shalt.err (!%p806_p5)
}
 0x153   : > { %s864_s30 = smov 128   ;;  %s865_s16 = smov 8  }
 0x154   : > { %720 = dma.vmem_to_hbm [thread:$0]  (%p946_p4), %s559_s20, 256, %s561_s21, %s544_s27, %s864_s30, %s864_s30, %s865_s16  }
 0x155 PF: > { %p726_p6 = scmp.ge.s32.totalorder %s860_s29, 2  ;;  %s575_s18 = sand.u32 1, %s840_s24  }
 0x156   : > { %s576_s19 = scalar_lea.sflag [#allocation5], %s575_s18 }
 0x157   : > { %p723_p7 = pnand %p726_p6, %p953_p8 }
 0x159   : > { %p724_p9 = pneg %p723_p7 }
 0x15b   : > { %835 = dma.done.wait (%p724_p9), %s576_s19, 256  }
 0x15c   : > { %837 = vsyncadd (%p724_p9), %s576_s19, 4294967040  ;;  %s20_s29 = sadd.s32 1, %s860_s29   ;;  %s1067_s24 = smov %s844_s25 }
 0x15d   : > { %p17_p10 = scmp.ge.s32.totalorder %s20_s29, 4   ;;  %s1068_s25 = smov %s848_s26 }
 0x15e   : > { %s1069_s26 = smov %s959_s14  ;;  %s1070_s27 = smov %s856_s28 }
 0x15f   : > { %s1071_s28 = smov %s1073_s9  ;;  %19 = sbr.rel (!%p17_p10) target bundleno = 4 (0x4), region = 83 }
 0x164   :  { %582 = vsyncpa [#allocation5], 1 }
 0x165   :  { %584 = vsyncpa [#allocation5 + $0x1], 1 }

</bundles_post_ra>
